<compile_context>
chip_gen: v6e
topology: v6e:2x2x1
jax: 0.10.0
libtpu: 0.0.40
codegen_flags: <defaults>
</compile_context>

<pallas_src>
import jax
import jax.numpy as jnp
from jax.experimental import pallas as pl
from jax.experimental.pallas import tpu as pltpu


# ----------------------------- Pallas kernel --------------------------------
def fused_net_kernel(x_ref, w_ref, b_ref, o_ref):
    # One MXU dot (f32 accumulate) + one VPU bias add; lane-dense (.,256) store.
    o_ref[...] = (jnp.dot(x_ref[...], w_ref[...],
                          preferred_element_type=jnp.float32)
                  + b_ref[...]).astype(o_ref.dtype)


def _num_m_tiles():
    """2 'parallel' M-tiles on dual-TensorCore v7x, else a single grid step
    (v5e/v6e have one TC; extra steps are pure pipeline overhead here)."""
    try:
        kind = jax.devices()[0].device_kind.lower()
    except Exception:
        return 1
    return 2 if "7" in kind else 1


def fused_affine_gemm(x_flat, big_w, big_b):
    """out = x_flat @ big_w + big_b in a single pallas_call."""
    M, K = x_flat.shape
    Dout = big_w.shape[1]
    n_tiles = _num_m_tiles()
    if M % (8 * n_tiles) != 0:          # keep sublane-aligned tiles
        n_tiles = 1
    tm = M // n_tiles

    return pl.pallas_call(
        fused_net_kernel,
        out_shape=jax.ShapeDtypeStruct((M, Dout), x_flat.dtype),
        grid_spec=pltpu.PrefetchScalarGridSpec(
            num_scalar_prefetch=0,
            grid=(n_tiles,),
            in_specs=[
                pl.BlockSpec((tm, K), lambda i: (i, 0)),     # activations tile
                pl.BlockSpec((K, Dout), lambda i: (0, 0)),   # folded weight (VMEM resident)
                pl.BlockSpec((1, Dout), lambda i: (0, 0)),   # folded bias
            ],
            out_specs=pl.BlockSpec((tm, Dout), lambda i: (i, 0)),
        ),
        compiler_params=pltpu.CompilerParams(
            dimension_semantics=("parallel",)),   # shards across TCs on v7x
    )(x_flat, big_w, big_b)


# --------------------------- parameter folding -------------------------------
def fold_net_params(conv_w, conv_b, w2, b2, w3, b3, H, W):
    """Fold Conv2d(k=3, pad=1) + Linear(64,32) + Linear(32,16) into one
    (Cin*H*W, H*W*D3) weight and (1, H*W*D3) bias.  Valid because the chain is
    purely affine and the spatial extent is tiny.  Pure parameter math (done
    once); no input data touched here."""
    Cout, Cin, KH, KW = conv_w.shape
    D3 = w3.shape[0]
    f32 = jnp.float32

    # Fold the two Linear layers into the conv's output channels.
    w23 = w2.T.astype(f32) @ w3.T.astype(f32)                    # (Cout, D3)
    wf = jnp.einsum('oikl,od->klid', conv_w.astype(f32), w23)    # (KH,KW,Cin,D3)
    bf = (conv_b.astype(f32) @ w23
          + b2.astype(f32) @ w3.T.astype(f32)
          + b3.astype(f32))                                      # (D3,)

    # Expand the 3x3 / pad=1 stencil into an explicit input-pixel -> output-pixel
    # matrix via one-hot tap-selection matrices (zero padding handled by the
    # "== out-of-range index never matches" construction).
    pad_h, pad_w = (KH - 1) // 2, (KW - 1) // 2
    hi = jnp.arange(H)
    wi = jnp.arange(W)
    kh = jnp.arange(KH)
    kw = jnp.arange(KW)
    mh = (hi[:, None, None] == hi[None, :, None] + kh[None, None, :] - pad_h)
    mw = (wi[:, None, None] == wi[None, :, None] + kw[None, None, :] - pad_w)
    # BigW[ci, hi, wi, h, w, d]
    big_w = jnp.einsum('aok,bpl,klid->iabopd',
                       mh.astype(f32), mw.astype(f32), wf)
    big_w = big_w.reshape(Cin * H * W, H * W * D3)   # rows (ci,hi,wi) == NCHW flatten
    big_b = jnp.tile(bf, H * W).reshape(1, H * W * D3)  # cols ordered (l, d)
    return big_w, big_b


# ------------------------------- forward -------------------------------------
def net_forward(x, conv_w, conv_b, w2, b2, w3, b3):
    """Mirrors NET.forward with m1=Conv2d(4,64,3,p=1), m2=Linear(64,32),
    m3=Linear(32,16)."""
    N, Cin, H, W = x.shape
    D3 = w3.shape[0]

    big_w, big_b = fold_net_params(conv_w, conv_b, w2, b2, w3, b3, H, W)
    x_flat = x.reshape(N, Cin * H * W).astype(jnp.float32)   # free NCHW flatten
    out = fused_affine_gemm(x_flat, big_w, big_b)            # (N, H*W*D3)

    # Deferred y.view(192,64,-1).permute(2,0,1): only this small (~192 KiB)
    # transpose of the final tensor is left outside the kernel.
    return out.reshape(N, H * W, D3).transpose(1, 0, 2)      # (H*W, N, D3)


def reference(x, conv_w, conv_b, w2, b2, w3, b3):
    y = jax.lax.conv_general_dilated(
        x, conv_w, window_strides=(1, 1), padding=((1, 1), (1, 1)),
        dimension_numbers=("NCHW", "OIHW", "NCHW"))
    y = y + conv_b[None, :, None, None]
    y1 = y.reshape(192, 64, -1).transpose(2, 0, 1)
    y1 = y1 @ w2.T + b2
    return y1 @ w3.T + b3


# --------------------------------- main ---------------------------------------
if __name__ == "__main__":
    key = jax.random.PRNGKey(0)
    k1, k2, k3, k4, k5, k6, k7 = jax.random.split(key, 7)

    # Shapes implied by y.view(192, 64, -1): batch 192, conv out channels 64.
    N, Cin, H, W = 192, 4, 4, 4
    Cout, D2, D3 = 64, 32, 16

    x = jax.random.normal(k1, (N, Cin, H, W), jnp.float32)
    conv_w = jax.random.normal(k2, (Cout, Cin, 3, 3), jnp.float32) * 0.1
    conv_b = jax.random.normal(k3, (Cout,), jnp.float32) * 0.1
    w2 = jax.random.normal(k4, (D2, Cout), jnp.float32) * 0.1
    b2 = jax.random.normal(k5, (D2,), jnp.float32) * 0.1
    w3 = jax.random.normal(k6, (D3, D2), jnp.float32) * 0.1
    b3 = jax.random.normal(k7, (D3,), jnp.float32) * 0.1

    fwd = jax.jit(net_forward)
    out = jax.block_until_ready(fwd(x, conv_w, conv_b, w2, b2, w3, b3))
    assert out.shape == (H * W, N, D3), out.shape

    ref = jax.block_until_ready(reference(x, conv_w, conv_b, w2, b2, w3, b3))
    err = float(jnp.max(jnp.abs(out - ref)))
    assert jnp.allclose(out, ref, rtol=5e-3, atol=5e-3), err

    print("KERNEL_OK")
</pallas_src>

<mosaic_0001>
module attributes {stable_mosaic.version = 11 : i64} {
  func.func @fused_net_kernel(%arg0: i32, %arg1: memref<192x64xf32, #tpu.memory_space<vmem>>, %arg2: memref<64x256xf32, #tpu.memory_space<vmem>>, %arg3: memref<1x256xf32, #tpu.memory_space<vmem>>, %arg4: memref<192x256xf32, #tpu.memory_space<vmem>>) attributes {dimension_semantics = [#tpu.dimension_semantics<parallel>], iteration_bounds = array<i64: 1>, scalar_prefetch = 0 : i64, scratch_operands = 0 : i64, tpu.core_type = #tpu.core_type<tc>, window_params = [{transform_indices = @transform_0, window_bounds = array<i64: 192, 64>}, {pipeline_mode = #tpu.pipeline_mode<synchronous>, transform_indices = @transform_1, window_bounds = array<i64: 64, 256>}, {pipeline_mode = #tpu.pipeline_mode<synchronous>, transform_indices = @transform_2, window_bounds = array<i64: 1, 256>}, {transform_indices = @transform_3, window_bounds = array<i64: 192, 256>}]} {
    %c0 = arith.constant 0 : index
    %c0_0 = arith.constant 0 : index
    %0 = vector.load %arg1[%c0, %c0_0] : memref<192x64xf32, #tpu.memory_space<vmem>>, vector<192x64xf32>
    %c0_1 = arith.constant 0 : index
    %c0_2 = arith.constant 0 : index
    %1 = vector.load %arg2[%c0_1, %c0_2] : memref<64x256xf32, #tpu.memory_space<vmem>>, vector<64x256xf32>
    %cst = arith.constant dense<0.000000e+00> : vector<192x256xf32>
    %2 = tpu.matmul %0, %1, %cst {dimension_numbers = #tpu.dot_dimension_numbers<[1], [0], [0], [1], [0, 0, 1, 1], [], []>} : vector<192x64xf32>, vector<64x256xf32>, vector<192x256xf32> -> vector<192x256xf32>
    %c0_3 = arith.constant 0 : index
    %c0_4 = arith.constant 0 : index
    %3 = vector.load %arg3[%c0_3, %c0_4] : memref<1x256xf32, #tpu.memory_space<vmem>>, vector<1x256xf32>
    %4 = vector.broadcast %3 : vector<1x256xf32> to vector<192x256xf32>
    %5 = arith.addf %2, %4 : vector<192x256xf32>
    %c0_5 = arith.constant 0 : index
    %c0_6 = arith.constant 0 : index
    %6 = vector.load %arg4[%c0_5, %c0_6] : memref<192x256xf32, #tpu.memory_space<vmem>>, vector<192x256xf32>
    tpu.vector_store %arg4[%c0_5, %c0_6], %5 {strides = array<i32>} : memref<192x256xf32, #tpu.memory_space<vmem>>, vector<192x256xf32>,
    return
  }
  func.func @transform_0(%arg0: i32) -> (i32, i32) {
    %c0_i32 = arith.constant 0 : i32
    %c0_i32_0 = arith.constant 0 : i32
    return %arg0, %c0_i32 : i32, i32
  }
  func.func @transform_1(%arg0: i32) -> (i32, i32) {
    %c0_i32 = arith.constant 0 : i32
    %c0_i32_0 = arith.constant 0 : i32
    %c0_i32_1 = arith.constant 0 : i32
    return %c0_i32, %c0_i32_0 : i32, i32
  }
  func.func @transform_2(%arg0: i32) -> (i32, i32) {
    %c0_i32 = arith.constant 0 : i32
    %c0_i32_0 = arith.constant 0 : i32
    %c0_i32_1 = arith.constant 0 : i32
    return %c0_i32, %c0_i32_0 : i32, i32
  }
  func.func @transform_3(%arg0: i32) -> (i32, i32) {
    %c0_i32 = arith.constant 0 : i32
    %c0_i32_0 = arith.constant 0 : i32
    return %arg0, %c0_i32 : i32, i32
  }
}

</mosaic_0001>

<bundles_post_ra>
// kernel: tile.8
= control target key start
LH: loop header
LB: loop body
LE: loop exit
PB: predicated region body
PF: predicated region fallthrough
CT: control target
= control target key end

     0   :  { %s28_s0 = inlined_call_operand.vmem [shape: f32[16], index: 0, kind: input, shape index: {}]   ;;  %s29_s1 = inlined_call_operand.vmem [shape: f32[16,16], index: 1, kind: output, shape index: {}]  }
   0x1   :  { %v4_v0 = vld [vmem:[%s28_s0] ss:$0 sm:$0xff] }
   0x2   :  { %5 = vst [vmem:[%s29_s1] sm:$0xff] %v4_v0  ;;  %8 = vst [vmem:[%s29_s1 + $0x8] sm:$0xff] %v4_v0 }

// kernel: tile.9
= control target key start
LH: loop header
LB: loop body
LE: loop exit
PB: predicated region body
PF: predicated region fallthrough
CT: control target
= control target key end

     0   :  { %s7_s6 = smov 3  ;;  %s21_s9 = smov 3  ;;  %vm4_vm0 = vcmask 130048   ;;  %vm11_vm1 = vcmask 1048448   ;;  %vm18_vm2 = vcmask 917248   ;;  %vm25_vm3 = vcmask 786048   ;;  %s131_s0 = inlined_call_operand.vmem [shape: f32[16,16], index: 0, kind: input, shape index: {}]   ;;  %s132_s1 = inlined_call_operand.vmem [shape: f32[1,256], index: 1, kind: output, shape index: {}]  }
   0x1   :  { %v69_v0 = vld [vmem:[%s131_s0 + $0x7] ss:$8 sm:%s7_s6]   ;;  %s84_s10 = smov 112   ;;  %v71_v1 = vld [vmem:[%s131_s0 + $0x5] ss:$8 sm:%s21_s9]   ;;  %s14_s13 = smov 3 }
   0x2   :  { %9 = vrot.lane.b32.xlu0 %v69_v0, %s84_s10  ;;  %s85_s14 = smov 80   ;;  %v70_v2 = vld [vmem:[%s131_s0 + $0x6] ss:$8 sm:%s14_s13]   ;;  %s28_s17 = smov 3  ;;  %vm32_vm4 = vcmask 654848   ;;  %vm39_vm5 = vcmask 523648  }
   0x3   :  { %23 = vrot.lane.b32.xlu1 %v71_v1, %s85_s14  ;;  %v72_v3 = vld [vmem:[%s131_s0 + $0x4] ss:$8 sm:%s28_s17]   ;;  %s35_s20 = smov 3  ;;  %s42_s21 = smov 3  ;;  %vm46_vm6 = vcmask 392448   ;;  %vm53_vm7 = vcmask 261248  }
   0x4   :  { %s86_s22 = smov 96   ;;  %s87_s23 = smov 64   ;;  %v73_v4 = vld [vmem:[%s131_s0 + $0x3] ss:$8 sm:%s35_s20]   ;;  %v74_v5 = vld [vmem:[%s131_s0 + $0x2] ss:$8 sm:%s42_s21]  }
   0x5   :  { %s2_s26 = smov 3  ;;  %s49_s29 = smov 3 }
   0x6   :  { %16 = vrot.lane.b32.xlu0 %v70_v2, %s86_s22  ;;  %v3_v6 = vld [vmem:[%s131_s0] ss:$8 sm:%s2_s26]   ;;  %s88_s3 = smov 48   ;;  %s89_s4 = smov 32  }
   0x7   :  { %30 = vrot.lane.b32.xlu1 %v72_v3, %s87_s23  ;;  %5 = vst.msk [vmem:[#allocation0] ss:$8 sm:$0x3] %vm4_vm0, %v3_v6   ;;  %v75_v7 = vld [vmem:[%s131_s0 + $0x1] ss:$8 sm:%s49_s29]   ;;  %s90_s0 = smov 16  }
   0xa   :  { %37 = vrot.lane.b32.xlu0 %v73_v4, %s88_s3 }
   0xb   :  { %44 = vrot.lane.b32.xlu1 %v74_v5, %s89_s4 }
   0xe   :  { %51 = vrot.lane.b32.xlu0 %v75_v7, %s90_s0 }
  0x74   :  { %v10_v8 = vpop.permute.xlu0 %9  }
  0x75   :  { %12 = vst.msk [vmem:[#allocation0] ss:$8 sm:$0x3] %vm11_vm1, %v10_v8   ;;  %v24_v9 = vpop.permute.xlu1 %23  }
  0x78   :  { %v17_v10 = vpop.permute.xlu0 %16  }
  0x79   :  { %19 = vst.msk [vmem:[#allocation0] ss:$8 sm:$0x3] %vm18_vm2, %v17_v10   ;;  %v31_v11 = vpop.permute.xlu1 %30  }
  0x7a   :  { %26 = vst.msk [vmem:[#allocation0] ss:$8 sm:$0x3] %vm25_vm3, %v24_v9  }
  0x7b   :  { %33 = vst.msk [vmem:[#allocation0] ss:$8 sm:$0x3] %vm32_vm4, %v31_v11  }
  0x7c   :  { %v38_v12 = vpop.permute.xlu0 %37  }
  0x7d   :  { %40 = vst.msk [vmem:[#allocation0] ss:$8 sm:$0x3] %vm39_vm5, %v38_v12   ;;  %v45_v13 = vpop.permute.xlu1 %44  }
  0x7e   :  { %47 = vst.msk [vmem:[#allocation0] ss:$8 sm:$0x3] %vm46_vm6, %v45_v13  }
  0x80   :  { %v52_v14 = vpop.permute.xlu0 %51  }
  0x81   :  { %54 = vst.msk [vmem:[#allocation0] ss:$8 sm:$0x3] %vm53_vm7, %v52_v14  }
  0x88   :  { %v59_v15 = vld [vmem:[#allocation0] sm:$0x1]  ;;  %v64_v16 = vld [vmem:[#allocation0 + $0x8] sm:$0x1] }
  0x89   :  { %62 = vst [vmem:[%s132_s1] sm:$0x1] %v59_v15  ;;  %76 = vst [vmem:[%s132_s1 + $0x1] sm:$0x1] %v64_v16 }

// kernel: net_forward.1
= control target key start
LH: loop header
LB: loop body
LE: loop exit
PB: predicated region body
PF: predicated region fallthrough
CT: control target
= control target key end

     0   :  { %v441_v3 = vmov 0.0   ;;  %vm66_vm0 = vcmask 523264   ;;  %v56_v41 = vlaneseq  ;;  %s829_s1 = inlined_call_operand.vmem [shape: f32[64,256], index: 1, kind: input, shape index: {}]   ;;  %s830_s0 = inlined_call_operand.vmem [shape: f32[192,64], index: 0, kind: input, shape index: {}]   ;;  %s831_s2 = inlined_call_operand.vmem [shape: f32[1,256], index: 2, kind: input, shape index: {}]   ;;  %s832_s3 = inlined_call_operand.vmem [shape: f32[192,256], index: 3, kind: output, shape index: {}]  }
   0x1   :  { %v53_v0 = vld [vmem:[%s829_s1 + $0x78] sm:$0xff]  ;;  %v52_v1 = vld [vmem:[%s829_s1 + $0x70] sm:$0xff]  ;;  %v51_v2 = vld [vmem:[%s829_s1 + $0x68] sm:$0xff]  ;;  %203 = vmatprep.mubr.f32.mxu0 %v441_v3  ;;  %275 = vmatprep.mubr.f32.mxu1 %v441_v3 }
   0x2   :  { %155 = vmatprep.subr.mxu0 %v53_v0  ;;  %424 = vmatprep.subr.mxu1 %v53_v0  ;;  %v50_v4 = vld [vmem:[%s829_s1 + $0x60] sm:$0xff]  ;;  %v49_v5 = vld [vmem:[%s829_s1 + $0x58] sm:$0xff]  ;;  %v48_v6 = vld [vmem:[%s829_s1 + $0x50] sm:$0xff]  ;;  %v57_v42 = vshrl.u32 %v56_v41, 7 }
   0x3   :  { %156 = vmatpush1.msra.mxu0 %v52_v1  ;;  %432 = vmatpush1.msra.mxu1 %v52_v1  ;;  %v47_v7 = vld [vmem:[%s829_s1 + $0x48] sm:$0xff]  ;;  %v46_v8 = vld [vmem:[%s829_s1 + $0x40] sm:$0xff]  ;;  %v45_v9 = vld [vmem:[%s829_s1 + $0x38] sm:$0xff] }
   0x4   :  { %157 = vmatprep.subr.mxu0 %v51_v2  ;;  %425 = vmatprep.subr.mxu1 %v51_v2  ;;  %v44_v10 = vld [vmem:[%s829_s1 + $0x30] sm:$0xff]  ;;  %v43_v11 = vld [vmem:[%s829_s1 + $0x28] sm:$0xff]  ;;  %v42_v12 = vld [vmem:[%s829_s1 + $0x20] sm:$0xff]  ;;  %v58_v43 = vsub.s32 0, %v57_v42  ;;  %v62_v45 = vsub.s32 1, %v57_v42 }
   0x5   :  { %158 = vmatpush1.msra.mxu0 %v50_v4  ;;  %433 = vmatpush1.msra.mxu1 %v50_v4  ;;  %v41_v13 = vld [vmem:[%s829_s1 + $0x18] sm:$0xff]  ;;  %v40_v14 = vld [vmem:[%s829_s1 + $0x10] sm:$0xff]  ;;  %v39_v15 = vld [vmem:[%s829_s1 + $0x8] sm:$0xff] }
   0x6   :  { %159 = vmatprep.subr.mxu0 %v49_v5  ;;  %426 = vmatprep.subr.mxu1 %v49_v5  ;;  %v38_v16 = vld [vmem:[%s829_s1] sm:$0xff]  ;;  %v15_v19 = vld [vmem:[%s830_s0 + $0x8] sm:$0xff]  ;;  %v16_v21 = vld [vmem:[%s830_s0 + $0x10] sm:$0xff] }
   0x7   :  { %160 = vmatpush1.msra.mxu0 %v48_v6  ;;  %434 = vmatpush1.msra.mxu1 %v48_v6  ;;  %v14_v17 = vld [vmem:[%s830_s0] sm:$0xff]  ;;  %v27_v20 = vld [vmem:[%s830_s0 + $0x68] sm:$0xff]  ;;  %v28_v22 = vld [vmem:[%s830_s0 + $0x70] sm:$0xff] }
   0x8   :  { %161 = vmatprep.subr.mxu0 %v47_v7  ;;  %427 = vmatprep.subr.mxu1 %v47_v7  ;;  %v26_v18 = vld [vmem:[%s830_s0 + $0x60] sm:$0xff]  ;;  %v17_v23 = vld [vmem:[%s830_s0 + $0x18] sm:$0xff]  ;;  %v19_v27 = vld [vmem:[%s830_s0 + $0x28] sm:$0xff] }
   0x9   :  { %162 = vmatpush1.msra.mxu0 %v46_v8  ;;  %435 = vmatpush1.msra.mxu1 %v46_v8  ;;  %v29_v24 = vld [vmem:[%s830_s0 + $0x78] sm:$0xff]  ;;  %v18_v25 = vld [vmem:[%s830_s0 + $0x20] sm:$0xff]  ;;  %v31_v28 = vld [vmem:[%s830_s0 + $0x88] sm:$0xff] }
   0xa   :  { %163 = vmatprep.subr.mxu0 %v45_v9  ;;  %428 = vmatprep.subr.mxu1 %v45_v9  ;;  %v30_v26 = vld [vmem:[%s830_s0 + $0x80] sm:$0xff]  ;;  %v20_v29 = vld [vmem:[%s830_s0 + $0x30] sm:$0xff]  ;;  %v21_v31 = vld [vmem:[%s830_s0 + $0x38] sm:$0xff] }
   0xb   :  { %164 = vmatpush1.msra.mxu0 %v44_v10  ;;  %436 = vmatpush1.msra.mxu1 %v44_v10  ;;  %v32_v30 = vld [vmem:[%s830_s0 + $0x90] sm:$0xff]  ;;  %v33_v32 = vld [vmem:[%s830_s0 + $0x98] sm:$0xff]  ;;  %v22_v33 = vld [vmem:[%s830_s0 + $0x40] sm:$0xff] }
   0xc   :  { %165 = vmatprep.subr.mxu0 %v43_v11  ;;  %429 = vmatprep.subr.mxu1 %v43_v11  ;;  %v34_v34 = vld [vmem:[%s830_s0 + $0xa0] sm:$0xff]  ;;  %v23_v35 = vld [vmem:[%s830_s0 + $0x48] sm:$0xff]  ;;  %v24_v37 = vld [vmem:[%s830_s0 + $0x50] sm:$0xff] }
   0xd   :  { %166 = vmatpush1.msra.mxu0 %v42_v12  ;;  %437 = vmatpush1.msra.mxu1 %v42_v12  ;;  %v35_v36 = vld [vmem:[%s830_s0 + $0xa8] sm:$0xff]  ;;  %v36_v38 = vld [vmem:[%s830_s0 + $0xb0] sm:$0xff]  ;;  %v25_v39 = vld [vmem:[%s830_s0 + $0x58] sm:$0xff] }
   0xe   :  { %167 = vmatprep.subr.mxu0 %v41_v13  ;;  %430 = vmatprep.subr.mxu1 %v41_v13  ;;  %v37_v40 = vld [vmem:[%s830_s0 + $0xb8] sm:$0xff]  ;;  %v54_v44 = vld [vmem:[%s831_s2] sm:$0x3] }
   0xf   :  { %168 = vmatpush1.msra.mxu0 %v40_v14  ;;  %438 = vmatpush1.msra.mxu1 %v40_v14  ;;  %v633_v46 = vrot.slane %v54_v44, %v58_v43  ;;  %v635_v47 = vrot.slane %v54_v44, %v62_v45 }
  0x10   :  { %169 = vmatprep.subr.mxu0 %v39_v15  ;;  %431 = vmatprep.subr.mxu1 %v39_v15 }
  0x11   :  { %170 = vmatpush1.msra.mxu0 %v38_v16  ;;  %439 = vmatpush1.msra.mxu1 %v38_v16 }
  0x12   :  { %400 = vmatmul.mubr.msk.f32.vlgmr.msra.gmra.mxu0 %vm66_vm0, %v14_v17  ;;  %412 = vmatmul.mubr.msk.f32.vlgmr.msra.gmra.mxu1 %vm66_vm0, %v26_v18 }
  0x13   :  { %209 = vmatprep.mubr.f32.mxu0 %v441_v3  ;;  %281 = vmatprep.mubr.f32.mxu1 %v441_v3 }
  0x16   :  { %401 = vmatmul.mubr.msk.f32.gmra.mxu0 %vm66_vm0, %v15_v19  ;;  %413 = vmatmul.mubr.msk.f32.gmra.mxu1 %vm66_vm0, %v27_v20 }
  0x17   :  { %215 = vmatprep.mubr.f32.mxu0 %v441_v3  ;;  %287 = vmatprep.mubr.f32.mxu1 %v441_v3 }
  0x1a   :  { %402 = vmatmul.mubr.msk.f32.gmra.mxu0 %vm66_vm0, %v16_v21  ;;  %414 = vmatmul.mubr.msk.f32.gmra.mxu1 %vm66_vm0, %v28_v22 }
  0x1b   :  { %221 = vmatprep.mubr.f32.mxu0 %v441_v3  ;;  %293 = vmatprep.mubr.f32.mxu1 %v441_v3 }
  0x1e   :  { %403 = vmatmul.mubr.msk.f32.gmra.mxu0 %vm66_vm0, %v17_v23  ;;  %415 = vmatmul.mubr.msk.f32.gmra.mxu1 %vm66_vm0, %v29_v24 }
  0x1f   :  { %227 = vmatprep.mubr.f32.mxu0 %v441_v3  ;;  %299 = vmatprep.mubr.f32.mxu1 %v441_v3 }
  0x22   :  { %404 = vmatmul.mubr.msk.f32.gmra.mxu0 %vm66_vm0, %v18_v25  ;;  %416 = vmatmul.mubr.msk.f32.gmra.mxu1 %vm66_vm0, %v30_v26 }
  0x23   :  { %233 = vmatprep.mubr.f32.mxu0 %v441_v3  ;;  %305 = vmatprep.mubr.f32.mxu1 %v441_v3 }
  0x26   :  { %405 = vmatmul.mubr.msk.f32.gmra.mxu0 %vm66_vm0, %v19_v27  ;;  %417 = vmatmul.mubr.msk.f32.gmra.mxu1 %vm66_vm0, %v31_v28 }
  0x27   :  { %239 = vmatprep.mubr.f32.mxu0 %v441_v3  ;;  %311 = vmatprep.mubr.f32.mxu1 %v441_v3 }
  0x2a   :  { %406 = vmatmul.mubr.msk.f32.gmra.mxu0 %vm66_vm0, %v20_v29  ;;  %418 = vmatmul.mubr.msk.f32.gmra.mxu1 %vm66_vm0, %v32_v30 }
  0x2b   :  { %245 = vmatprep.mubr.f32.mxu0 %v441_v3  ;;  %317 = vmatprep.mubr.f32.mxu1 %v441_v3 }
  0x2e   :  { %407 = vmatmul.mubr.msk.f32.gmra.mxu0 %vm66_vm0, %v21_v31  ;;  %419 = vmatmul.mubr.msk.f32.gmra.mxu1 %vm66_vm0, %v33_v32 }
  0x2f   :  { %251 = vmatprep.mubr.f32.mxu0 %v441_v3  ;;  %323 = vmatprep.mubr.f32.mxu1 %v441_v3 }
  0x32   :  { %408 = vmatmul.mubr.msk.f32.gmra.mxu0 %vm66_vm0, %v22_v33  ;;  %420 = vmatmul.mubr.msk.f32.gmra.mxu1 %vm66_vm0, %v34_v34 }
  0x33   :  { %257 = vmatprep.mubr.f32.mxu0 %v441_v3  ;;  %329 = vmatprep.mubr.f32.mxu1 %v441_v3 }
  0x36   :  { %409 = vmatmul.mubr.msk.f32.gmra.mxu0 %vm66_vm0, %v23_v35  ;;  %421 = vmatmul.mubr.msk.f32.gmra.mxu1 %vm66_vm0, %v35_v36 }
  0x37   :  { %263 = vmatprep.mubr.f32.mxu0 %v441_v3  ;;  %335 = vmatprep.mubr.f32.mxu1 %v441_v3 }
  0x3a   :  { %410 = vmatmul.mubr.msk.f32.gmra.mxu0 %vm66_vm0, %v24_v37  ;;  %422 = vmatmul.mubr.msk.f32.gmra.mxu1 %vm66_vm0, %v36_v38 }
  0x3b   :  { %269 = vmatprep.mubr.f32.mxu0 %v441_v3  ;;  %341 = vmatprep.mubr.f32.mxu1 %v441_v3 }
  0x3e   :  { %411 = vmatmul.mubr.msk.f32.gmra.mxu0 %vm66_vm0, %v25_v39  ;;  %423 = vmatmul.mubr.msk.f32.gmra.mxu1 %vm66_vm0, %v37_v40 }
  0xd2   :  { %v205_v48 = vpop.f32.mrf.mxu0  ;;  %v277_v49 = vpop.f32.mrf.mxu1 }
  0xd3   :  { %v206_v50 = vadd.f32 %v205_v48, %v633_v46  ;;  %v278_v51 = vadd.f32 %v277_v49, %v633_v46 }
  0xd4   :  { %v207_v52 = vpop.f32.mrf.mxu0  ;;  %v279_v53 = vpop.f32.mrf.mxu1 }
  0xd5   :  { %348 = vst [vmem:[%s832_s3] sm:$0xff] %v206_v50  ;;  %372 = vst [vmem:[%s832_s3 + $0xc0] sm:$0xff] %v278_v51  ;;  %v208_v54 = vadd.f32 %v207_v52, %v635_v47  ;;  %v280_v55 = vadd.f32 %v279_v53, %v635_v47 }
  0xd6   :  { %v211_v56 = vpop.f32.mrf.mxu0  ;;  %v283_v57 = vpop.f32.mrf.mxu1 }
  0xd7   :  { %349 = vst [vmem:[%s832_s3 + $0x8] sm:$0xff] %v208_v54  ;;  %373 = vst [vmem:[%s832_s3 + $0xc8] sm:$0xff] %v280_v55  ;;  %v212_v58 = vadd.f32 %v211_v56, %v633_v46  ;;  %v284_v59 = vadd.f32 %v283_v57, %v633_v46 }
  0xd8   :  { %v213_v60 = vpop.f32.mrf.mxu0  ;;  %v285_v61 = vpop.f32.mrf.mxu1 }
  0xd9   :  { %350 = vst [vmem:[%s832_s3 + $0x10] sm:$0xff] %v212_v58  ;;  %374 = vst [vmem:[%s832_s3 + $0xd0] sm:$0xff] %v284_v59  ;;  %v214_v62 = vadd.f32 %v213_v60, %v635_v47  ;;  %v286_v63 = vadd.f32 %v285_v61, %v635_v47 }
  0xda   :  { %v217_v0 = vpop.f32.mrf.mxu0  ;;  %v289_v1 = vpop.f32.mrf.mxu1 }
  0xdb   :  { %351 = vst [vmem:[%s832_s3 + $0x18] sm:$0xff] %v214_v62  ;;  %375 = vst [vmem:[%s832_s3 + $0xd8] sm:$0xff] %v286_v63  ;;  %v218_v2 = vadd.f32 %v217_v0, %v633_v46  ;;  %v290_v3 = vadd.f32 %v289_v1, %v633_v46 }
  0xdc   :  { %v219_v4 = vpop.f32.mrf.mxu0  ;;  %v291_v5 = vpop.f32.mrf.mxu1 }
  0xdd   :  { %352 = vst [vmem:[%s832_s3 + $0x20] sm:$0xff] %v218_v2  ;;  %376 = vst [vmem:[%s832_s3 + $0xe0] sm:$0xff] %v290_v3  ;;  %v220_v6 = vadd.f32 %v219_v4, %v635_v47  ;;  %v292_v7 = vadd.f32 %v291_v5, %v635_v47 }
  0xde   :  { %v223_v8 = vpop.f32.mrf.mxu0  ;;  %v295_v9 = vpop.f32.mrf.mxu1 }
  0xdf   :  { %353 = vst [vmem:[%s832_s3 + $0x28] sm:$0xff] %v220_v6  ;;  %377 = vst [vmem:[%s832_s3 + $0xe8] sm:$0xff] %v292_v7  ;;  %v224_v10 = vadd.f32 %v223_v8, %v633_v46  ;;  %v296_v11 = vadd.f32 %v295_v9, %v633_v46 }
  0xe0   :  { %v225_v12 = vpop.f32.mrf.mxu0  ;;  %v297_v13 = vpop.f32.mrf.mxu1 }
  0xe1   :  { %354 = vst [vmem:[%s832_s3 + $0x30] sm:$0xff] %v224_v10  ;;  %378 = vst [vmem:[%s832_s3 + $0xf0] sm:$0xff] %v296_v11  ;;  %v226_v14 = vadd.f32 %v225_v12, %v635_v47  ;;  %v298_v15 = vadd.f32 %v297_v13, %v635_v47 }
  0xe2   :  { %v229_v16 = vpop.f32.mrf.mxu0  ;;  %v301_v17 = vpop.f32.mrf.mxu1 }
  0xe3   :  { %355 = vst [vmem:[%s832_s3 + $0x38] sm:$0xff] %v226_v14  ;;  %379 = vst [vmem:[%s832_s3 + $0xf8] sm:$0xff] %v298_v15  ;;  %v230_v18 = vadd.f32 %v229_v16, %v633_v46  ;;  %v302_v19 = vadd.f32 %v301_v17, %v633_v46 }
  0xe4   :  { %v231_v20 = vpop.f32.mrf.mxu0  ;;  %v303_v21 = vpop.f32.mrf.mxu1 }
  0xe5   :  { %356 = vst [vmem:[%s832_s3 + $0x40] sm:$0xff] %v230_v18  ;;  %380 = vst [vmem:[%s832_s3 + $0x100] sm:$0xff] %v302_v19  ;;  %v232_v22 = vadd.f32 %v231_v20, %v635_v47  ;;  %v304_v23 = vadd.f32 %v303_v21, %v635_v47 }
  0xe6   :  { %v235_v24 = vpop.f32.mrf.mxu0  ;;  %v307_v25 = vpop.f32.mrf.mxu1 }
  0xe7   :  { %357 = vst [vmem:[%s832_s3 + $0x48] sm:$0xff] %v232_v22  ;;  %381 = vst [vmem:[%s832_s3 + $0x108] sm:$0xff] %v304_v23  ;;  %v236_v26 = vadd.f32 %v235_v24, %v633_v46  ;;  %v308_v27 = vadd.f32 %v307_v25, %v633_v46 }
  0xe8   :  { %v237_v28 = vpop.f32.mrf.mxu0  ;;  %v309_v29 = vpop.f32.mrf.mxu1 }
  0xe9   :  { %358 = vst [vmem:[%s832_s3 + $0x50] sm:$0xff] %v236_v26  ;;  %382 = vst [vmem:[%s832_s3 + $0x110] sm:$0xff] %v308_v27  ;;  %v238_v30 = vadd.f32 %v237_v28, %v635_v47  ;;  %v310_v31 = vadd.f32 %v309_v29, %v635_v47 }
  0xea   :  { %v241_v32 = vpop.f32.mrf.mxu0  ;;  %v313_v33 = vpop.f32.mrf.mxu1 }
  0xeb   :  { %359 = vst [vmem:[%s832_s3 + $0x58] sm:$0xff] %v238_v30  ;;  %383 = vst [vmem:[%s832_s3 + $0x118] sm:$0xff] %v310_v31  ;;  %v242_v34 = vadd.f32 %v241_v32, %v633_v46  ;;  %v314_v35 = vadd.f32 %v313_v33, %v633_v46 }
  0xec   :  { %v243_v36 = vpop.f32.mrf.mxu0  ;;  %v315_v37 = vpop.f32.mrf.mxu1 }
  0xed   :  { %360 = vst [vmem:[%s832_s3 + $0x60] sm:$0xff] %v242_v34  ;;  %384 = vst [vmem:[%s832_s3 + $0x120] sm:$0xff] %v314_v35  ;;  %v244_v38 = vadd.f32 %v243_v36, %v635_v47  ;;  %v316_v39 = vadd.f32 %v315_v37, %v635_v47 }
  0xee   :  { %v247_v40 = vpop.f32.mrf.mxu0  ;;  %v319_v41 = vpop.f32.mrf.mxu1 }
  0xef   :  { %361 = vst [vmem:[%s832_s3 + $0x68] sm:$0xff] %v244_v38  ;;  %385 = vst [vmem:[%s832_s3 + $0x128] sm:$0xff] %v316_v39  ;;  %v248_v42 = vadd.f32 %v247_v40, %v633_v46  ;;  %v320_v43 = vadd.f32 %v319_v41, %v633_v46 }
  0xf0   :  { %v249_v44 = vpop.f32.mrf.mxu0  ;;  %v321_v45 = vpop.f32.mrf.mxu1 }
  0xf1   :  { %362 = vst [vmem:[%s832_s3 + $0x70] sm:$0xff] %v248_v42  ;;  %386 = vst [vmem:[%s832_s3 + $0x130] sm:$0xff] %v320_v43  ;;  %v250_v48 = vadd.f32 %v249_v44, %v635_v47  ;;  %v322_v49 = vadd.f32 %v321_v45, %v635_v47 }
  0xf2   :  { %v253_v50 = vpop.f32.mrf.mxu0  ;;  %v325_v51 = vpop.f32.mrf.mxu1 }
  0xf3   :  { %363 = vst [vmem:[%s832_s3 + $0x78] sm:$0xff] %v250_v48  ;;  %387 = vst [vmem:[%s832_s3 + $0x138] sm:$0xff] %v322_v49  ;;  %v254_v52 = vadd.f32 %v253_v50, %v633_v46  ;;  %v326_v53 = vadd.f32 %v325_v51, %v633_v46 }
  0xf4   :  { %v255_v54 = vpop.f32.mrf.mxu0  ;;  %v327_v55 = vpop.f32.mrf.mxu1 }
  0xf5   :  { %364 = vst [vmem:[%s832_s3 + $0x80] sm:$0xff] %v254_v52  ;;  %388 = vst [vmem:[%s832_s3 + $0x140] sm:$0xff] %v326_v53  ;;  %v256_v56 = vadd.f32 %v255_v54, %v635_v47  ;;  %v328_v57 = vadd.f32 %v327_v55, %v635_v47 }
  0xf6   :  { %v259_v58 = vpop.f32.mrf.mxu0  ;;  %v331_v59 = vpop.f32.mrf.mxu1 }
  0xf7   :  { %365 = vst [vmem:[%s832_s3 + $0x88] sm:$0xff] %v256_v56  ;;  %389 = vst [vmem:[%s832_s3 + $0x148] sm:$0xff] %v328_v57  ;;  %v260_v60 = vadd.f32 %v259_v58, %v633_v46  ;;  %v332_v61 = vadd.f32 %v331_v59, %v633_v46 }
  0xf8   :  { %v261_v62 = vpop.f32.mrf.mxu0  ;;  %v333_v63 = vpop.f32.mrf.mxu1 }
  0xf9   :  { %366 = vst [vmem:[%s832_s3 + $0x90] sm:$0xff] %v260_v60  ;;  %390 = vst [vmem:[%s832_s3 + $0x150] sm:$0xff] %v332_v61  ;;  %v262_v0 = vadd.f32 %v261_v62, %v635_v47  ;;  %v334_v1 = vadd.f32 %v333_v63, %v635_v47 }
  0xfa   :  { %v265_v2 = vpop.f32.mrf.mxu0  ;;  %v337_v3 = vpop.f32.mrf.mxu1 }
  0xfb   :  { %367 = vst [vmem:[%s832_s3 + $0x98] sm:$0xff] %v262_v0  ;;  %391 = vst [vmem:[%s832_s3 + $0x158] sm:$0xff] %v334_v1  ;;  %v266_v4 = vadd.f32 %v265_v2, %v633_v46  ;;  %v338_v5 = vadd.f32 %v337_v3, %v633_v46 }
  0xfc   :  { %v267_v6 = vpop.f32.mrf.mxu0  ;;  %v339_v7 = vpop.f32.mrf.mxu1 }
  0xfd   :  { %368 = vst [vmem:[%s832_s3 + $0xa0] sm:$0xff] %v266_v4  ;;  %392 = vst [vmem:[%s832_s3 + $0x160] sm:$0xff] %v338_v5  ;;  %v268_v8 = vadd.f32 %v267_v6, %v635_v47  ;;  %v340_v9 = vadd.f32 %v339_v7, %v635_v47 }
  0xfe   :  { %v271_v10 = vpop.f32.mrf.mxu0  ;;  %v343_v11 = vpop.f32.mrf.mxu1 }
  0xff   :  { %369 = vst [vmem:[%s832_s3 + $0xa8] sm:$0xff] %v268_v8  ;;  %393 = vst [vmem:[%s832_s3 + $0x168] sm:$0xff] %v340_v9  ;;  %v272_v12 = vadd.f32 %v271_v10, %v633_v46  ;;  %v344_v13 = vadd.f32 %v343_v11, %v633_v46 }
 0x100   :  { %v273_v14 = vpop.f32.mrf.mxu0  ;;  %v345_v15 = vpop.f32.mrf.mxu1 }
 0x101   :  { %370 = vst [vmem:[%s832_s3 + $0xb0] sm:$0xff] %v272_v12  ;;  %394 = vst [vmem:[%s832_s3 + $0x170] sm:$0xff] %v344_v13  ;;  %v274_v16 = vadd.f32 %v273_v14, %v635_v47  ;;  %v346_v17 = vadd.f32 %v345_v15, %v635_v47 }
 0x103   :  { %371 = vst [vmem:[%s832_s3 + $0xb8] sm:$0xff] %v274_v16  ;;  %395 = vst [vmem:[%s832_s3 + $0x178] sm:$0xff] %v346_v17 }

</bundles_post_ra>
